<compile_context>
chip_gen: v7x
topology: tpu7x:2x2x1
jax: 0.10.0
libtpu: 0.0.40
codegen_flags: <defaults>
</compile_context>

<pallas_src>
import functools
import math

import jax
import jax.numpy as jnp
from jax.experimental import pallas as pl
from jax.experimental.pallas import tpu as pltpu


def _lstm_kernel(x_ref, w_ih_ref, w_hh_ref, b_ref, w_fc_ref, b_fc_ref,
                 out_ref, xproj_ref, *, batch, seq_len, hidden_size):
    B, T, H = batch, seq_len, hidden_size
    I = x_ref.shape[-1]

    # ---- Hoisted input projection (no recurrent dependence) ----------------
    # One batched matmul over all timesteps, bias folded in once:
    #   (B*T, I) @ (I, 4H) + (1, 4H) -> (B*T, 4H)
    x_flat = x_ref[...].reshape(B * T, I)
    proj = (jnp.dot(x_flat, w_ih_ref[...], preferred_element_type=jnp.float32)
            + b_ref[...])
    # Stage time-major (T, B, 4H) in VMEM scratch so the recurrence reads the
    # leading dim at static offsets. B is static & tiny, so this is a couple
    # of static strided stores, done once, off the serial path.
    for b in range(B):
        xproj_ref[:, b, :] = proj[b * T:(b + 1) * T, :]

    w_hh = w_hh_ref[...]  # (H, 4H), kept resident across the loop

    # ---- Recurrence: only h @ W_hh + gate math on the serial path ----------
    h = jnp.zeros((B, H), jnp.float32)
    c = jnp.zeros((B, H), jnp.float32)

    for t in range(T):  # static trip count -> straight-line code, static reads
        gates = xproj_ref[t] + jnp.dot(h, w_hh,
                                       preferred_element_type=jnp.float32)
        # One full-width sigmoid pass and one full-width tanh pass (the gate
        # vector is <= one f32 vreg wide); slice out the gates afterwards.
        sig = jax.nn.sigmoid(gates)   # lanes [0:H]=i, [H:2H]=f, [3H:4H]=o used
        tnh = jnp.tanh(gates)         # lanes [2H:3H]=g used
        i_g = sig[:, 0 * H:1 * H]
        f_g = sig[:, 1 * H:2 * H]
        g_g = tnh[:, 2 * H:3 * H]
        o_g = sig[:, 3 * H:4 * H]
        c = f_g * c + i_g * g_g
        h = o_g * jnp.tanh(c)

    # TODO(synk): dropout is a no-op in eval mode; training-mode dropout
    # (random mask) is intentionally not emulated here.
    act = jnp.maximum(h, 0.0)  # ReLU (default activation_function)
    out_ref[...] = (jnp.dot(act, w_fc_ref[...],
                            preferred_element_type=jnp.float32)
                    + b_fc_ref[...]).astype(out_ref.dtype)


def lstm_forward(x, params):
    """x: (B, T, I) float32 (PyTorch batch_first layout, consumed directly)."""
    B, T, I = x.shape
    H = params["w_hh_t"].shape[0]
    O = params["w_fc_t"].shape[1]

    kernel = functools.partial(_lstm_kernel, batch=B, seq_len=T, hidden_size=H)
    vmem = functools.partial(pl.BlockSpec, memory_space=pltpu.MemorySpace.VMEM)

    return pl.pallas_call(
        kernel,
        out_shape=jax.ShapeDtypeStruct((B, O), jnp.float32),
        in_specs=[vmem(), vmem(), vmem(), vmem(), vmem(), vmem()],
        out_specs=vmem(),
        scratch_shapes=[
            pltpu.VMEM((T, B, 4 * H), jnp.float32),  # staged input projection
        ],
    )(x, params["w_ih_t"], params["w_hh_t"], params["bias"],
      params["w_fc_t"], params["b_fc"])


def init_params(key, input_features, hidden_size, output_size):
    """Deterministic init mirroring nn.LSTM / nn.Linear shapes."""
    k = 1.0 / math.sqrt(hidden_size)
    keys = jax.random.split(key, 6)
    w_ih = jax.random.uniform(keys[0], (4 * hidden_size, input_features),
                              jnp.float32, -k, k)
    w_hh = jax.random.uniform(keys[1], (4 * hidden_size, hidden_size),
                              jnp.float32, -k, k)
    b_ih = jax.random.uniform(keys[2], (4 * hidden_size,), jnp.float32, -k, k)
    b_hh = jax.random.uniform(keys[3], (4 * hidden_size,), jnp.float32, -k, k)
    kf = 1.0 / math.sqrt(hidden_size)
    w_fc = jax.random.uniform(keys[4], (output_size, hidden_size),
                              jnp.float32, -kf, kf)
    b_fc = jax.random.uniform(keys[5], (output_size,), jnp.float32, -kf, kf)
    return {
        "w_ih_t": w_ih.T,                       # (I, 4H)
        "w_hh_t": w_hh.T,                       # (H, 4H)
        "bias": (b_ih + b_hh)[None, :],         # (1, 4H)
        "w_fc_t": w_fc.T,                       # (H, O)
        "b_fc": b_fc[None, :],                  # (1, O)
    }


def reference_forward(x, params):
    """Pure-JAX reference (lax.scan) replicating the PyTorch forward (eval)."""
    B, T, I = x.shape
    H = params["w_hh_t"].shape[0]
    h0 = jnp.zeros((B, H), jnp.float32)
    c0 = jnp.zeros((B, H), jnp.float32)

    def step(carry, x_t):
        h, c = carry
        gates = x_t @ params["w_ih_t"] + h @ params["w_hh_t"] + params["bias"]
        i_g = jax.nn.sigmoid(gates[:, 0 * H:1 * H])
        f_g = jax.nn.sigmoid(gates[:, 1 * H:2 * H])
        g_g = jnp.tanh(gates[:, 2 * H:3 * H])
        o_g = jax.nn.sigmoid(gates[:, 3 * H:4 * H])
        c = f_g * c + i_g * g_g
        h = o_g * jnp.tanh(c)
        return (h, c), None

    (h_last, _), _ = jax.lax.scan(step, (h0, c0),
                                  jnp.transpose(x, (1, 0, 2)))
    act = jnp.maximum(h_last, 0.0)
    return act @ params["w_fc_t"] + params["b_fc"]


if __name__ == "__main__":
    batch, seq, in_feat, hidden, out_size = 2, 8, 4, 32, 1

    key = jax.random.PRNGKey(0)
    kx, kp = jax.random.split(key)
    x = jax.random.normal(kx, (batch, seq, in_feat), jnp.float32)
    params = init_params(kp, in_feat, hidden, out_size)

    out = lstm_forward(x, params)
    out = jax.block_until_ready(out)

    ref = reference_forward(x, params)
    assert out.shape == (batch, out_size)
    assert jnp.allclose(out, ref, atol=1e-5, rtol=1e-5), (out, ref)

    print("KERNEL_OK")
</pallas_src>

<mosaic_0001>
module attributes {stable_mosaic.version = 11 : i64} {
  func.func @_lstm_kernel(%arg0: memref<2x8x4xf32, #tpu.memory_space<vmem>>, %arg1: memref<4x128xf32, #tpu.memory_space<vmem>>, %arg2: memref<32x128xf32, #tpu.memory_space<vmem>>, %arg3: memref<1x128xf32, #tpu.memory_space<vmem>>, %arg4: memref<32x1xf32, #tpu.memory_space<vmem>>, %arg5: memref<1x1xf32, #tpu.memory_space<vmem>>, %arg6: memref<2x1xf32, #tpu.memory_space<vmem>>, %arg7: memref<8x2x128xf32, #tpu.memory_space<vmem>>) attributes {dimension_semantics = [], scalar_prefetch = 0 : i64, scratch_operands = 1 : i64, tpu.core_type = #tpu.core_type<tc>} {
    %c0 = arith.constant 0 : index
    %c0_0 = arith.constant 0 : index
    %c0_1 = arith.constant 0 : index
    %0 = vector.load %arg0[%c0, %c0_0, %c0_1] : memref<2x8x4xf32, #tpu.memory_space<vmem>>, vector<2x8x4xf32>
    %1 = vector.shape_cast %0 : vector<2x8x4xf32> to vector<16x4xf32>
    %c0_2 = arith.constant 0 : index
    %c0_3 = arith.constant 0 : index
    %2 = vector.load %arg1[%c0_2, %c0_3] : memref<4x128xf32, #tpu.memory_space<vmem>>, vector<4x128xf32>
    %cst = arith.constant dense<0.000000e+00> : vector<16x128xf32>
    %3 = tpu.matmul %1, %2, %cst {dimension_numbers = #tpu.dot_dimension_numbers<[1], [0], [0], [1], [0, 0, 1, 1], [], []>} : vector<16x4xf32>, vector<4x128xf32>, vector<16x128xf32> -> vector<16x128xf32>
    %c0_4 = arith.constant 0 : index
    %c0_5 = arith.constant 0 : index
    %4 = vector.load %arg3[%c0_4, %c0_5] : memref<1x128xf32, #tpu.memory_space<vmem>>, vector<1x128xf32>
    %5 = vector.broadcast %4 : vector<1x128xf32> to vector<16x128xf32>
    %6 = arith.addf %3, %5 : vector<16x128xf32>
    %7 = vector.extract_strided_slice %6 {offsets = [0, 0], sizes = [8, 128], strides = [1, 1]} : vector<16x128xf32> to vector<8x128xf32>
    %c0_6 = arith.constant 0 : index
    %c0_7 = arith.constant 0 : index
    %c0_8 = arith.constant 0 : index
    %8 = vector.load %arg7[%c0_6, %c0_7, %c0_8] : memref<8x2x128xf32, #tpu.memory_space<vmem>>, vector<8x1x128xf32>
    %9 = vector.shape_cast %8 : vector<8x1x128xf32> to vector<8x128xf32>
    %10 = vector.shape_cast %7 : vector<8x128xf32> to vector<8x1x128xf32>
    tpu.vector_store %arg7[%c0_6, %c0_7, %c0_8], %10 {strides = array<i32>} : memref<8x2x128xf32, #tpu.memory_space<vmem>>, vector<8x1x128xf32>,
    %11 = vector.extract_strided_slice %6 {offsets = [8, 0], sizes = [8, 128], strides = [1, 1]} : vector<16x128xf32> to vector<8x128xf32>
    %c0_9 = arith.constant 0 : index
    %c1 = arith.constant 1 : index
    %c0_10 = arith.constant 0 : index
    %12 = vector.load %arg7[%c0_9, %c1, %c0_10] : memref<8x2x128xf32, #tpu.memory_space<vmem>>, vector<8x1x128xf32>
    %13 = vector.shape_cast %12 : vector<8x1x128xf32> to vector<8x128xf32>
    %14 = vector.shape_cast %11 : vector<8x128xf32> to vector<8x1x128xf32>
    tpu.vector_store %arg7[%c0_9, %c1, %c0_10], %14 {strides = array<i32>} : memref<8x2x128xf32, #tpu.memory_space<vmem>>, vector<8x1x128xf32>,
    %c0_11 = arith.constant 0 : index
    %c0_12 = arith.constant 0 : index
    %15 = vector.load %arg2[%c0_11, %c0_12] : memref<32x128xf32, #tpu.memory_space<vmem>>, vector<32x128xf32>
    %cst_13 = arith.constant 0.000000e+00 : f32
    %16 = vector.broadcast %cst_13 : f32 to vector<2x32xf32>
    %cst_14 = arith.constant 0.000000e+00 : f32
    %17 = vector.broadcast %cst_14 : f32 to vector<2x32xf32>
    %c0_15 = arith.constant 0 : index
    %c0_16 = arith.constant 0 : index
    %c0_17 = arith.constant 0 : index
    %18 = vector.load %arg7[%c0_15, %c0_16, %c0_17] : memref<8x2x128xf32, #tpu.memory_space<vmem>>, vector<1x2x128xf32>
    %19 = vector.shape_cast %18 : vector<1x2x128xf32> to vector<2x128xf32>
    %cst_18 = arith.constant dense<0.000000e+00> : vector<2x128xf32>
    %20 = tpu.matmul %16, %15, %cst_18 {dimension_numbers = #tpu.dot_dimension_numbers<[1], [0], [0], [1], [0, 0, 1, 1], [], []>} : vector<2x32xf32>, vector<32x128xf32>, vector<2x128xf32> -> vector<2x128xf32>
    %21 = arith.addf %19, %20 : vector<2x128xf32>
    %22 = arith.negf %21 : vector<2x128xf32>
    %23 = math.exp %22 : vector<2x128xf32>
    %cst_19 = arith.constant 1.000000e+00 : f32
    %24 = vector.broadcast %cst_19 : f32 to vector<2x128xf32>
    %25 = arith.addf %24, %23 : vector<2x128xf32>
    %26 = arith.divf %24, %25 : vector<2x128xf32>
    %27 = math.tanh %21 : vector<2x128xf32>
    %28 = vector.extract_strided_slice %26 {offsets = [0, 0], sizes = [2, 32], strides = [1, 1]} : vector<2x128xf32> to vector<2x32xf32>
    %29 = vector.extract_strided_slice %26 {offsets = [0, 32], sizes = [2, 32], strides = [1, 1]} : vector<2x128xf32> to vector<2x32xf32>
    %30 = vector.extract_strided_slice %27 {offsets = [0, 64], sizes = [2, 32], strides = [1, 1]} : vector<2x128xf32> to vector<2x32xf32>
    %31 = vector.extract_strided_slice %26 {offsets = [0, 96], sizes = [2, 32], strides = [1, 1]} : vector<2x128xf32> to vector<2x32xf32>
    %32 = arith.mulf %29, %17 : vector<2x32xf32>
    %33 = arith.mulf %28, %30 : vector<2x32xf32>
    %34 = arith.addf %32, %33 : vector<2x32xf32>
    %35 = math.tanh %34 : vector<2x32xf32>
    %36 = arith.mulf %31, %35 : vector<2x32xf32>
    %c1_20 = arith.constant 1 : index
    %c0_21 = arith.constant 0 : index
    %c0_22 = arith.constant 0 : index
    %37 = vector.load %arg7[%c1_20, %c0_21, %c0_22] : memref<8x2x128xf32, #tpu.memory_space<vmem>>, vector<1x2x128xf32>
    %38 = vector.shape_cast %37 : vector<1x2x128xf32> to vector<2x128xf32>
    %cst_23 = arith.constant dense<0.000000e+00> : vector<2x128xf32>
    %39 = tpu.matmul %36, %15, %cst_23 {dimension_numbers = #tpu.dot_dimension_numbers<[1], [0], [0], [1], [0, 0, 1, 1], [], []>} : vector<2x32xf32>, vector<32x128xf32>, vector<2x128xf32> -> vector<2x128xf32>
    %40 = arith.addf %38, %39 : vector<2x128xf32>
    %41 = arith.negf %40 : vector<2x128xf32>
    %42 = math.exp %41 : vector<2x128xf32>
    %cst_24 = arith.constant 1.000000e+00 : f32
    %43 = vector.broadcast %cst_24 : f32 to vector<2x128xf32>
    %44 = arith.addf %43, %42 : vector<2x128xf32>
    %45 = arith.divf %43, %44 : vector<2x128xf32>
    %46 = math.tanh %40 : vector<2x128xf32>
    %47 = vector.extract_strided_slice %45 {offsets = [0, 0], sizes = [2, 32], strides = [1, 1]} : vector<2x128xf32> to vector<2x32xf32>
    %48 = vector.extract_strided_slice %45 {offsets = [0, 32], sizes = [2, 32], strides = [1, 1]} : vector<2x128xf32> to vector<2x32xf32>
    %49 = vector.extract_strided_slice %46 {offsets = [0, 64], sizes = [2, 32], strides = [1, 1]} : vector<2x128xf32> to vector<2x32xf32>
    %50 = vector.extract_strided_slice %45 {offsets = [0, 96], sizes = [2, 32], strides = [1, 1]} : vector<2x128xf32> to vector<2x32xf32>
    %51 = arith.mulf %48, %34 : vector<2x32xf32>
    %52 = arith.mulf %47, %49 : vector<2x32xf32>
    %53 = arith.addf %51, %52 : vector<2x32xf32>
    %54 = math.tanh %53 : vector<2x32xf32>
    %55 = arith.mulf %50, %54 : vector<2x32xf32>
    %c2 = arith.constant 2 : index
    %c0_25 = arith.constant 0 : index
    %c0_26 = arith.constant 0 : index
    %56 = vector.load %arg7[%c2, %c0_25, %c0_26] : memref<8x2x128xf32, #tpu.memory_space<vmem>>, vector<1x2x128xf32>
    %57 = vector.shape_cast %56 : vector<1x2x128xf32> to vector<2x128xf32>
    %cst_27 = arith.constant dense<0.000000e+00> : vector<2x128xf32>
    %58 = tpu.matmul %55, %15, %cst_27 {dimension_numbers = #tpu.dot_dimension_numbers<[1], [0], [0], [1], [0, 0, 1, 1], [], []>} : vector<2x32xf32>, vector<32x128xf32>, vector<2x128xf32> -> vector<2x128xf32>
    %59 = arith.addf %57, %58 : vector<2x128xf32>
    %60 = arith.negf %59 : vector<2x128xf32>
    %61 = math.exp %60 : vector<2x128xf32>
    %cst_28 = arith.constant 1.000000e+00 : f32
    %62 = vector.broadcast %cst_28 : f32 to vector<2x128xf32>
    %63 = arith.addf %62, %61 : vector<2x128xf32>
    %64 = arith.divf %62, %63 : vector<2x128xf32>
    %65 = math.tanh %59 : vector<2x128xf32>
    %66 = vector.extract_strided_slice %64 {offsets = [0, 0], sizes = [2, 32], strides = [1, 1]} : vector<2x128xf32> to vector<2x32xf32>
    %67 = vector.extract_strided_slice %64 {offsets = [0, 32], sizes = [2, 32], strides = [1, 1]} : vector<2x128xf32> to vector<2x32xf32>
    %68 = vector.extract_strided_slice %65 {offsets = [0, 64], sizes = [2, 32], strides = [1, 1]} : vector<2x128xf32> to vector<2x32xf32>
    %69 = vector.extract_strided_slice %64 {offsets = [0, 96], sizes = [2, 32], strides = [1, 1]} : vector<2x128xf32> to vector<2x32xf32>
    %70 = arith.mulf %67, %53 : vector<2x32xf32>
    %71 = arith.mulf %66, %68 : vector<2x32xf32>
    %72 = arith.addf %70, %71 : vector<2x32xf32>
    %73 = math.tanh %72 : vector<2x32xf32>
    %74 = arith.mulf %69, %73 : vector<2x32xf32>
    %c3 = arith.constant 3 : index
    %c0_29 = arith.constant 0 : index
    %c0_30 = arith.constant 0 : index
    %75 = vector.load %arg7[%c3, %c0_29, %c0_30] : memref<8x2x128xf32, #tpu.memory_space<vmem>>, vector<1x2x128xf32>
    %76 = vector.shape_cast %75 : vector<1x2x128xf32> to vector<2x128xf32>
    %cst_31 = arith.constant dense<0.000000e+00> : vector<2x128xf32>
    %77 = tpu.matmul %74, %15, %cst_31 {dimension_numbers = #tpu.dot_dimension_numbers<[1], [0], [0], [1], [0, 0, 1, 1], [], []>} : vector<2x32xf32>, vector<32x128xf32>, vector<2x128xf32> -> vector<2x128xf32>
    %78 = arith.addf %76, %77 : vector<2x128xf32>
    %79 = arith.negf %78 : vector<2x128xf32>
    %80 = math.exp %79 : vector<2x128xf32>
    %cst_32 = arith.constant 1.000000e+00 : f32
    %81 = vector.broadcast %cst_32 : f32 to vector<2x128xf32>
    %82 = arith.addf %81, %80 : vector<2x128xf32>
    %83 = arith.divf %81, %82 : vector<2x128xf32>
    %84 = math.tanh %78 : vector<2x128xf32>
    %85 = vector.extract_strided_slice %83 {offsets = [0, 0], sizes = [2, 32], strides = [1, 1]} : vector<2x128xf32> to vector<2x32xf32>
    %86 = vector.extract_strided_slice %83 {offsets = [0, 32], sizes = [2, 32], strides = [1, 1]} : vector<2x128xf32> to vector<2x32xf32>
    %87 = vector.extract_strided_slice %84 {offsets = [0, 64], sizes = [2, 32], strides = [1, 1]} : vector<2x128xf32> to vector<2x32xf32>
    %88 = vector.extract_strided_slice %83 {offsets = [0, 96], sizes = [2, 32], strides = [1, 1]} : vector<2x128xf32> to vector<2x32xf32>
    %89 = arith.mulf %86, %72 : vector<2x32xf32>
    %90 = arith.mulf %85, %87 : vector<2x32xf32>
    %91 = arith.addf %89, %90 : vector<2x32xf32>
    %92 = math.tanh %91 : vector<2x32xf32>
    %93 = arith.mulf %88, %92 : vector<2x32xf32>
    %c4 = arith.constant 4 : index
    %c0_33 = arith.constant 0 : index
    %c0_34 = arith.constant 0 : index
    %94 = vector.load %arg7[%c4, %c0_33, %c0_34] : memref<8x2x128xf32, #tpu.memory_space<vmem>>, vector<1x2x128xf32>
    %95 = vector.shape_cast %94 : vector<1x2x128xf32> to vector<2x128xf32>
    %cst_35 = arith.constant dense<0.000000e+00> : vector<2x128xf32>
    %96 = tpu.matmul %93, %15, %cst_35 {dimension_numbers = #tpu.dot_dimension_numbers<[1], [0], [0], [1], [0, 0, 1, 1], [], []>} : vector<2x32xf32>, vector<32x128xf32>, vector<2x128xf32> -> vector<2x128xf32>
    %97 = arith.addf %95, %96 : vector<2x128xf32>
    %98 = arith.negf %97 : vector<2x128xf32>
    %99 = math.exp %98 : vector<2x128xf32>
    %cst_36 = arith.constant 1.000000e+00 : f32
    %100 = vector.broadcast %cst_36 : f32 to vector<2x128xf32>
    %101 = arith.addf %100, %99 : vector<2x128xf32>
    %102 = arith.divf %100, %101 : vector<2x128xf32>
    %103 = math.tanh %97 : vector<2x128xf32>
    %104 = vector.extract_strided_slice %102 {offsets = [0, 0], sizes = [2, 32], strides = [1, 1]} : vector<2x128xf32> to vector<2x32xf32>
    %105 = vector.extract_strided_slice %102 {offsets = [0, 32], sizes = [2, 32], strides = [1, 1]} : vector<2x128xf32> to vector<2x32xf32>
    %106 = vector.extract_strided_slice %103 {offsets = [0, 64], sizes = [2, 32], strides = [1, 1]} : vector<2x128xf32> to vector<2x32xf32>
    %107 = vector.extract_strided_slice %102 {offsets = [0, 96], sizes = [2, 32], strides = [1, 1]} : vector<2x128xf32> to vector<2x32xf32>
    %108 = arith.mulf %105, %91 : vector<2x32xf32>
    %109 = arith.mulf %104, %106 : vector<2x32xf32>
    %110 = arith.addf %108, %109 : vector<2x32xf32>
    %111 = math.tanh %110 : vector<2x32xf32>
    %112 = arith.mulf %107, %111 : vector<2x32xf32>
    %c5 = arith.constant 5 : index
    %c0_37 = arith.constant 0 : index
    %c0_38 = arith.constant 0 : index
    %113 = vector.load %arg7[%c5, %c0_37, %c0_38] : memref<8x2x128xf32, #tpu.memory_space<vmem>>, vector<1x2x128xf32>
    %114 = vector.shape_cast %113 : vector<1x2x128xf32> to vector<2x128xf32>
    %cst_39 = arith.constant dense<0.000000e+00> : vector<2x128xf32>
    %115 = tpu.matmul %112, %15, %cst_39 {dimension_numbers = #tpu.dot_dimension_numbers<[1], [0], [0], [1], [0, 0, 1, 1], [], []>} : vector<2x32xf32>, vector<32x128xf32>, vector<2x128xf32> -> vector<2x128xf32>
    %116 = arith.addf %114, %115 : vector<2x128xf32>
    %117 = arith.negf %116 : vector<2x128xf32>
    %118 = math.exp %117 : vector<2x128xf32>
    %cst_40 = arith.constant 1.000000e+00 : f32
    %119 = vector.broadcast %cst_40 : f32 to vector<2x128xf32>
    %120 = arith.addf %119, %118 : vector<2x128xf32>
    %121 = arith.divf %119, %120 : vector<2x128xf32>
    %122 = math.tanh %116 : vector<2x128xf32>
    %123 = vector.extract_strided_slice %121 {offsets = [0, 0], sizes = [2, 32], strides = [1, 1]} : vector<2x128xf32> to vector<2x32xf32>
    %124 = vector.extract_strided_slice %121 {offsets = [0, 32], sizes = [2, 32], strides = [1, 1]} : vector<2x128xf32> to vector<2x32xf32>
    %125 = vector.extract_strided_slice %122 {offsets = [0, 64], sizes = [2, 32], strides = [1, 1]} : vector<2x128xf32> to vector<2x32xf32>
    %126 = vector.extract_strided_slice %121 {offsets = [0, 96], sizes = [2, 32], strides = [1, 1]} : vector<2x128xf32> to vector<2x32xf32>
    %127 = arith.mulf %124, %110 : vector<2x32xf32>
    %128 = arith.mulf %123, %125 : vector<2x32xf32>
    %129 = arith.addf %127, %128 : vector<2x32xf32>
    %130 = math.tanh %129 : vector<2x32xf32>
    %131 = arith.mulf %126, %130 : vector<2x32xf32>
    %c6 = arith.constant 6 : index
    %c0_41 = arith.constant 0 : index
    %c0_42 = arith.constant 0 : index
    %132 = vector.load %arg7[%c6, %c0_41, %c0_42] : memref<8x2x128xf32, #tpu.memory_space<vmem>>, vector<1x2x128xf32>
    %133 = vector.shape_cast %132 : vector<1x2x128xf32> to vector<2x128xf32>
    %cst_43 = arith.constant dense<0.000000e+00> : vector<2x128xf32>
    %134 = tpu.matmul %131, %15, %cst_43 {dimension_numbers = #tpu.dot_dimension_numbers<[1], [0], [0], [1], [0, 0, 1, 1], [], []>} : vector<2x32xf32>, vector<32x128xf32>, vector<2x128xf32> -> vector<2x128xf32>
    %135 = arith.addf %133, %134 : vector<2x128xf32>
    %136 = arith.negf %135 : vector<2x128xf32>
    %137 = math.exp %136 : vector<2x128xf32>
    %cst_44 = arith.constant 1.000000e+00 : f32
    %138 = vector.broadcast %cst_44 : f32 to vector<2x128xf32>
    %139 = arith.addf %138, %137 : vector<2x128xf32>
    %140 = arith.divf %138, %139 : vector<2x128xf32>
    %141 = math.tanh %135 : vector<2x128xf32>
    %142 = vector.extract_strided_slice %140 {offsets = [0, 0], sizes = [2, 32], strides = [1, 1]} : vector<2x128xf32> to vector<2x32xf32>
    %143 = vector.extract_strided_slice %140 {offsets = [0, 32], sizes = [2, 32], strides = [1, 1]} : vector<2x128xf32> to vector<2x32xf32>
    %144 = vector.extract_strided_slice %141 {offsets = [0, 64], sizes = [2, 32], strides = [1, 1]} : vector<2x128xf32> to vector<2x32xf32>
    %145 = vector.extract_strided_slice %140 {offsets = [0, 96], sizes = [2, 32], strides = [1, 1]} : vector<2x128xf32> to vector<2x32xf32>
    %146 = arith.mulf %143, %129 : vector<2x32xf32>
    %147 = arith.mulf %142, %144 : vector<2x32xf32>
    %148 = arith.addf %146, %147 : vector<2x32xf32>
    %149 = math.tanh %148 : vector<2x32xf32>
    %150 = arith.mulf %145, %149 : vector<2x32xf32>
    %c7 = arith.constant 7 : index
    %c0_45 = arith.constant 0 : index
    %c0_46 = arith.constant 0 : index
    %151 = vector.load %arg7[%c7, %c0_45, %c0_46] : memref<8x2x128xf32, #tpu.memory_space<vmem>>, vector<1x2x128xf32>
    %152 = vector.shape_cast %151 : vector<1x2x128xf32> to vector<2x128xf32>
    %cst_47 = arith.constant dense<0.000000e+00> : vector<2x128xf32>
    %153 = tpu.matmul %150, %15, %cst_47 {dimension_numbers = #tpu.dot_dimension_numbers<[1], [0], [0], [1], [0, 0, 1, 1], [], []>} : vector<2x32xf32>, vector<32x128xf32>, vector<2x128xf32> -> vector<2x128xf32>
    %154 = arith.addf %152, %153 : vector<2x128xf32>
    %155 = arith.negf %154 : vector<2x128xf32>
    %156 = math.exp %155 : vector<2x128xf32>
    %cst_48 = arith.constant 1.000000e+00 : f32
    %157 = vector.broadcast %cst_48 : f32 to vector<2x128xf32>
    %158 = arith.addf %157, %156 : vector<2x128xf32>
    %159 = arith.divf %157, %158 : vector<2x128xf32>
    %160 = math.tanh %154 : vector<2x128xf32>
    %161 = vector.extract_strided_slice %159 {offsets = [0, 0], sizes = [2, 32], strides = [1, 1]} : vector<2x128xf32> to vector<2x32xf32>
    %162 = vector.extract_strided_slice %159 {offsets = [0, 32], sizes = [2, 32], strides = [1, 1]} : vector<2x128xf32> to vector<2x32xf32>
    %163 = vector.extract_strided_slice %160 {offsets = [0, 64], sizes = [2, 32], strides = [1, 1]} : vector<2x128xf32> to vector<2x32xf32>
    %164 = vector.extract_strided_slice %159 {offsets = [0, 96], sizes = [2, 32], strides = [1, 1]} : vector<2x128xf32> to vector<2x32xf32>
    %165 = arith.mulf %162, %148 : vector<2x32xf32>
    %166 = arith.mulf %161, %163 : vector<2x32xf32>
    %167 = arith.addf %165, %166 : vector<2x32xf32>
    %168 = math.tanh %167 : vector<2x32xf32>
    %169 = arith.mulf %164, %168 : vector<2x32xf32>
    %cst_49 = arith.constant 0.000000e+00 : f32
    %170 = vector.broadcast %cst_49 : f32 to vector<2x32xf32>
    %171 = arith.maximumf %169, %170 : vector<2x32xf32>
    %c0_50 = arith.constant 0 : index
    %c0_51 = arith.constant 0 : index
    %172 = vector.load %arg4[%c0_50, %c0_51] : memref<32x1xf32, #tpu.memory_space<vmem>>, vector<32x1xf32>
    %cst_52 = arith.constant dense<0.000000e+00> : vector<2x1xf32>
    %173 = tpu.matmul %171, %172, %cst_52 {dimension_numbers = #tpu.dot_dimension_numbers<[1], [0], [0], [1], [0, 0, 1, 1], [], []>} : vector<2x32xf32>, vector<32x1xf32>, vector<2x1xf32> -> vector<2x1xf32>
    %c0_53 = arith.constant 0 : index
    %c0_54 = arith.constant 0 : index
    %174 = vector.load %arg5[%c0_53, %c0_54] : memref<1x1xf32, #tpu.memory_space<vmem>>, vector<1x1xf32>
    %175 = vector.broadcast %174 : vector<1x1xf32> to vector<2x1xf32>
    %176 = arith.addf %173, %175 : vector<2x1xf32>
    %c0_55 = arith.constant 0 : index
    %c0_56 = arith.constant 0 : index
    %177 = vector.load %arg6[%c0_55, %c0_56] : memref<2x1xf32, #tpu.memory_space<vmem>>, vector<2x1xf32>
    tpu.vector_store %arg6[%c0_55, %c0_56], %176 {strides = array<i32>} : memref<2x1xf32, #tpu.memory_space<vmem>>, vector<2x1xf32>,
    return
  }
}

</mosaic_0001>

<bundles_post_ra>
// kernel: tpu_custom_call.1
= control target key start
LH: loop header
LB: loop body
LE: loop exit
PB: predicated region body
PF: predicated region fallthrough
CT: control target
= control target key end

     0   :  { %vm42_vm0 = vcmask 1043456   ;;  %vm35_vm1 = vcmask 31744   ;;  %v1469_v3 = vmov 0.0|0.0   ;;  %vm1470_vm2 = vmmov 0   ;;  %s1474_s10 = smov 32   ;;  %s1651_s1 = inlined_call_operand.vmem [shape: f32[4,128], index: 1, kind: input, shape index: {}]   ;;  %s1652_s0 = inlined_call_operand.vmem [shape: f32[2,8,4], index: 0, kind: input, shape index: {}]   ;;  %s1653_s2 = inlined_call_operand.vmem [shape: f32[32,128], index: 2, kind: input, shape index: {}]   ;;  %s1654_s3 = inlined_call_operand.vmem [shape: f32[1,128], index: 3, kind: input, shape index: {}]   ;;  %s1655_s4 = inlined_call_operand.vmem [shape: f32[32,1], index: 4, kind: input, shape index: {}]   ;;  %s1656_s5 = inlined_call_operand.<no memory space> [shape: f32[1,1], index: 5, kind: input, shape index: {}]   ;;  %s1657_s6 = inlined_call_operand.vmem [shape: f32[2,1], index: 6, kind: output, shape index: {}]  }
   0x1   :  { %v27_v0 = vld [vmem:[%s1651_s1] sm:$0xf]  ;;  %v26_v2 = vld [vmem:[%s1652_s0 + $0x8] sm:$0xff]  ;;  %1345 = vmatprep.subr.bf16.mxu1 %v1469_v3  ;;  %v255_v6 = vld [vmem:[%s1653_s2 + $0x10] sm:$0xff]  ;;  %v1471_v9 = vmov 0.0   ;;  %v126_v13 = vlaneseq  ;;  %vm258_vm3 = vcmask 261120  }
   0x2   :  { %v25_v1 = vld [vmem:[%s1652_s0] sm:$0xff]  ;;  %1241 = vmatprep.subr.msk.mxu0 %vm42_vm0, %v27_v0  ;;  %v254_v5 = vld [vmem:[%s1653_s2 + $0x8] sm:$0xff]  ;;  %v256_v8 = vld [vmem:[%s1653_s2 + $0x18] sm:$0xff]  ;;  %1254 = vmatprep.mubr.msk.f32.mxu1 %vm1470_vm2, %v1471_v9  ;;  %v1472_v11 = vmov 1966171168   ;;  %vm1158_vm4 = vcmask 1024  }
   0x3   :  { %1243 = vmatprep.mubr.msk.f32.mxu0 %vm35_vm1, %v25_v1  ;;  %v253_v4 = vld [vmem:[%s1653_s2] sm:$0xff]  ;;  %1242 = vmatpush3.msk.msra.mxu0 %vm42_vm0, %v27_v0  ;;  %v1540_v10 = vpack.c.bf16 %v256_v8, %v255_v6  ;;  %v124_v12 = vunpack.c.l.s4 %v1472_v11  ;;  %v127_v15 = vshrl.u32 %v126_v13, 7 }
   0x4   :  { %v1530_v7 = vpack.c.bf16 %v254_v5, %v253_v4  ;;  %1244 = vmatmul.mubr.msk.f32.vlgmr.msra.gmra.mrb[0].mxu0 %vm35_vm1, %v26_v2  ;;  %1351 = vmatprep.subr.bf16.mxu0 %v1469_v3  ;;  %v1164_v16 = vld [vmem:[%s1654_s3] ss:$0 sm:$0xff]  ;;  %s1473_s3 = smov 64  }
   0x5   :  { %1265 = vmatprep.mubr.msk.f32.mxu0 %vm1470_vm2, %v1471_v9  ;;  %v125_v14 = vunpack.c.0.s8 %v124_v12 }
   0x6   :  { %1347 = vmatpush3.bf16.msra.mxu1 %v1530_v7  ;;  %1353 = vmatpush3.bf16.msra.mxu0 %v1530_v7 }
   0x7   :  { %1348 = vmatprep.subr.bf16.mxu1 %v1469_v3  ;;  %1354 = vmatprep.subr.bf16.mxu0 %v1469_v3  ;;  %v128_v17 = vsub.s32 %v125_v14, %v127_v15 }
   0xa   :  { %1350 = vmatpush3.bf16.msra.mxu1 %v1540_v10  ;;  %1356 = vmatpush3.bf16.msra.mxu0 %v1540_v10 }
   0xb   :  { %1357 = vmatprep.subr.bf16.mxu1 %v1469_v3  ;;  %1363 = vmatprep.subr.bf16.mxu0 %v1469_v3 }
   0xd   :  { %1255 = vmatmul.mubr.f32.vlgmr.msra.gmra.mrb[0].mxu1 %v1471_v9 }
   0xe   :  { %1359 = vmatpush3.bf16.msra.mxu1 %v1530_v7  ;;  %1276 = vmatprep.mubr.msk.f32.mxu1 %vm1470_vm2, %v1471_v9 }
   0xf   :  { %1360 = vmatprep.subr.bf16.mxu1 %v1469_v3 }
  0x12   :  { %1362 = vmatpush3.bf16.msra.mxu1 %v1540_v10 }
  0x13   :  { %1369 = vmatprep.subr.bf16.mxu1 %v1469_v3 }
  0xd7   :  { %v1245_v18 = vpop.f32.mrb[0].mxu0 }
  0xd8   :  { %v118_v19 = vadd.f32 %v1245_v18, %v1164_v16  ;;  %v112_v20 = vpop.f32.mrb[1].mxu0 }
  0xd9   :  { %v113_v21 = vadd.f32 %v1164_v16, %v112_v20 }
  0xda   :  { %v188_v22 = vcombine.high %v118_v19, %v118_v19  ;;  %v195_v23 = vrot.slane %v118_v19, %v128_v17 }
  0xdb   :  { %v122_v24 = vcombine.high %v113_v21, %v113_v21  ;;  %v129_v25 = vrot.slane %v113_v21, %v128_v17 }
  0xdc   :  { %v202_v26 = vrot.slane %v188_v22, %v128_v17  ;;  %v203_v27 = vcombine.high %v195_v23, %v195_v23  ;;  %v211_v28 = vrot.slane %v195_v23, %v128_v17  ;;  %1172 = vst.sshfl [vmem:[#allocation2 + $0x1] sm:$0x1 pattern:$0x73625140] %v195_v23 }
  0xdd   :  { %v136_v29 = vrot.slane %v122_v24, %v128_v17  ;;  %v137_v30 = vcombine.high %v129_v25, %v129_v25  ;;  %v145_v31 = vrot.slane %v129_v25, %v128_v17  ;;  %1168 = vst.sshfl [vmem:[#allocation2] sm:$0x1 pattern:$0x73625140] %v129_v25 }
  0xde   :  { %v204_v32 = vcombine.high %v202_v26, %v202_v26  ;;  %v218_v33 = vrot.slane %v202_v26, %v128_v17  ;;  %v225_v34 = vrot.slane %v203_v27, %v128_v17  ;;  %v233_v35 = vcombine.high %v211_v28, %v211_v28  ;;  %1173 = vst.sshfl [vmem:[#allocation2 + $0x3] sm:$0x1 pattern:$0x73625140] %v203_v27 }
  0xdf   :  { %1174 = vst.sshfl [vmem:[#allocation2 + $0x9] sm:$0x1 pattern:$0x73625140] %v202_v26  ;;  %v138_v36 = vcombine.high %v136_v29, %v136_v29  ;;  %v152_v37 = vrot.slane %v136_v29, %v128_v17  ;;  %v159_v38 = vrot.slane %v137_v30, %v128_v17  ;;  %v167_v39 = vcombine.high %v145_v31, %v145_v31 }
  0xe0   :  { %1169 = vst.sshfl [vmem:[#allocation2 + $0x2] sm:$0x1 pattern:$0x73625140] %v137_v30  ;;  %v328_v40 = vpop.f32.mrb[0].mxu1  ;;  %v232_v41 = vrot.slane %v204_v32, %v128_v17  ;;  %v234_v42 = vcombine.high %v218_v33, %v218_v33  ;;  %v235_v43 = vcombine.high %v225_v34, %v225_v34 }
  0xe1   :  { %1170 = vst.sshfl [vmem:[#allocation2 + $0x8] sm:$0x1 pattern:$0x73625140] %v136_v29  ;;  %247 = vst [vmem:[#allocation2 + $0x5] sm:$0x1] %v233_v35  ;;  %v166_v45 = vrot.slane %v138_v36, %v128_v17  ;;  %v168_v46 = vcombine.high %v152_v37, %v152_v37  ;;  %v169_v47 = vcombine.high %v159_v38, %v159_v38 }
  0xe2   :  { %1175 = vst.sshfl [vmem:[#allocation2 + $0xb] sm:$0x1 pattern:$0x73625140] %v204_v32  ;;  %v1256_v44 = vpop.f32.mrb[1].mxu1  ;;  %v236_v48 = vcombine.high %v232_v41, %v232_v41 }
  0xe3   :  { %181 = vst [vmem:[#allocation2 + $0x4] sm:$0x1] %v167_v39  ;;  %1171 = vst.sshfl [vmem:[#allocation2 + $0xa] sm:$0x1 pattern:$0x73625140] %v138_v36  ;;  %v170_v49 = vcombine.high %v166_v45, %v166_v45 }
  0xe4   :  { %248 = vst [vmem:[#allocation2 + $0x7] sm:$0x1] %v235_v43  ;;  %251 = vst [vmem:[#allocation2 + $0xd] sm:$0x1] %v234_v42  ;;  %v257_v50 = vld [vmem:[#allocation2] sm:$0x3] }
  0xe5   :  { %182 = vst [vmem:[#allocation2 + $0x6] sm:$0x1] %v169_v47  ;;  %185 = vst [vmem:[#allocation2 + $0xc] sm:$0x1] %v168_v46  ;;  %v332_v51 = vadd.f32 %v328_v40, %v257_v50 }
  0xe6   :  { %252 = vst [vmem:[#allocation2 + $0xf] sm:$0x1] %v236_v48  ;;  %186 = vst [vmem:[#allocation2 + $0xe] sm:$0x1] %v170_v49 }
  0xe7   :  { %1405 = vtanh.f32 %v332_v51  ;;  %v1176_v53 = vmul.f32 -1.442695, %v332_v51  ;;  %v358_v2 = vld [vmem:[#allocation2 + $0x2] sm:$0x3] }
  0xe9   :  { %1407 = vpow2.f32 %v1176_v53 }
  0xea   :  { %v460_v24 = vld [vmem:[#allocation2 + $0x4] sm:$0x3] }
  0xec   :  { %v562_v42 = vld [vmem:[#allocation2 + $0x6] sm:$0x3] }
  0xf1   :  { %v1406_v52 = vpop.eup %1405 }
  0xf2   :  { %342 = vrot.lane.b32.xlu0 %v1406_v52, %s1473_s3 }
  0xf3   :  { %v1408_v54 = vpop.eup %1407 }
  0xf4   :  { %v336_v55 = vadd.f32 1.0, %v1408_v54 }
  0xf6   :  { %1409 = vrcp.f32 %v336_v55 }
 0x100   :  { %v1410_v56 = vpop.eup %1409 }
 0x101   :  { %v340_v59 = vmul.f32 0.0, %v1410_v56 }
 0x164   :  { %v343_v57 = vpop.permute.xlu0 %342 }
 0x165   :  { %v345_v58 = vmul.f32 %v1410_v56, %v343_v57 }
 0x167   :  { %347 = vrot.lane.b32.xlu0 %v345_v58, %s1474_s10 }
 0x1d9   :  { %v348_v60 = vpop.permute.xlu0 %347 }
 0x1da   :  { %v350_v61 = vadd.f32 %v348_v60, %v340_v59  ;;  %v664_v60 = vld [vmem:[#allocation2 + $0x8] sm:$0x3] }
 0x1dc   :  { %1411 = vtanh.f32 %v350_v61 }
 0x1e6   :  { %v1412_v62 = vpop.eup %1411 }
 0x1e7   :  { %353 = vrot.lane.b32.xlu1 %v1412_v62, %s1473_s3 }
 0x259   :  { %v354_v63 = vpop.permute.xlu1 %353 }
 0x25a   :  { %v356_v0 = vmul.f32 %v1410_v56, %v354_v63 }
 0x25c   :  { %360 = vrot.lane.b32.xlu1 %v356_v0, %s1474_s10 }
 0x2ce   :  { %v361_v1 = vpop.permute.xlu1 %360 }
 0x2cf   :  { %1266 = vmatmul.mubr.msk.f32.vlgmr.msra.gmra.mrb[2].mxu0 %vm258_vm3, %v361_v1 }
 0x2d0   :  { %1365 = vmatpush3.bf16.msra.mxu0 %v1530_v7  ;;  %1287 = vmatprep.mubr.msk.f32.mxu0 %vm1470_vm2, %v1471_v9 }
 0x2d1   :  { %1366 = vmatprep.subr.bf16.mxu0 %v1469_v3 }
 0x2d4   :  { %1368 = vmatpush3.bf16.msra.mxu0 %v1540_v10 }
 0x2d5   :  { %1375 = vmatprep.subr.bf16.mxu0 %v1469_v3 }
 0x3a2   :  { %v430_v4 = vpop.f32.mrb[2].mxu0 }
 0x3a3   :  { %v434_v5 = vadd.f32 %v430_v4, %v358_v2  ;;  %v1267_v6 = vpop.f32.mrb[3].mxu0 }
 0x3a5   :  { %1413 = vtanh.f32 %v434_v5  ;;  %v1178_v11 = vmul.f32 -1.442695, %v434_v5 }
 0x3a7   :  { %1415 = vpow2.f32 %v1178_v11 }
 0x3af   :  { %v1414_v8 = vpop.eup %1413 }
 0x3b0   :  { %444 = vrot.lane.b32.xlu0 %v1414_v8, %s1473_s3 }
 0x3b1   :  { %v1416_v12 = vpop.eup %1415 }
 0x3b2   :  { %v438_v13 = vadd.f32 1.0, %v1416_v12 }
 0x3b4   :  { %1417 = vrcp.f32 %v438_v13 }
 0x3be   :  { %v1418_v14 = vpop.eup %1417 }
 0x3bf   :  { %v442_v17 = vmul.f32 %v1418_v14, %v350_v61 }
 0x422   :  { %v445_v15 = vpop.permute.xlu0 %444 }
 0x423   :  { %v447_v16 = vmul.f32 %v1418_v14, %v445_v15 }
 0x425   :  { %449 = vrot.lane.b32.xlu1 %v447_v16, %s1474_s10 }
 0x497   :  { %v450_v18 = vpop.permute.xlu1 %449 }
 0x498   :  { %v452_v19 = vadd.f32 %v450_v18, %v442_v17  ;;  %v766_v18 = vld [vmem:[#allocation2 + $0xa] sm:$0x3] }
 0x49a   :  { %1419 = vtanh.f32 %v452_v19 }
 0x4a4   :  { %v1420_v20 = vpop.eup %1419 }
 0x4a5   :  { %455 = vrot.lane.b32.xlu0 %v1420_v20, %s1473_s3 }
 0x517   :  { %v456_v21 = vpop.permute.xlu0 %455 }
 0x518   :  { %v458_v22 = vmul.f32 %v1418_v14, %v456_v21 }
 0x51a   :  { %462 = vrot.lane.b32.xlu1 %v458_v22, %s1474_s10 }
 0x58c   :  { %v463_v23 = vpop.permute.xlu1 %462 }
 0x58d   :  { %1277 = vmatmul.mubr.msk.f32.vlgmr.msra.gmra.mrb[2].mxu1 %vm258_vm3, %v463_v23 }
 0x58e   :  { %1371 = vmatpush3.bf16.msra.mxu1 %v1530_v7  ;;  %1298 = vmatprep.mubr.msk.f32.mxu1 %vm1470_vm2, %v1471_v9 }
 0x58f   :  { %1372 = vmatprep.subr.bf16.mxu1 %v1469_v3 }
 0x592   :  { %1374 = vmatpush3.bf16.msra.mxu1 %v1540_v10 }
 0x593   :  { %1381 = vmatprep.subr.bf16.mxu1 %v1469_v3 }
 0x660   :  { %v532_v25 = vpop.f32.mrb[2].mxu1 }
 0x661   :  { %v536_v26 = vadd.f32 %v532_v25, %v460_v24  ;;  %v1278_v27 = vpop.f32.mrb[3].mxu1 }
 0x663   :  { %1421 = vtanh.f32 %v536_v26  ;;  %v1180_v29 = vmul.f32 -1.442695, %v536_v26 }
 0x665   :  { %1423 = vpow2.f32 %v1180_v29 }
 0x66d   :  { %v1422_v28 = vpop.eup %1421 }
 0x66e   :  { %546 = vrot.lane.b32.xlu0 %v1422_v28, %s1473_s3 }
 0x66f   :  { %v1424_v30 = vpop.eup %1423 }
 0x670   :  { %v540_v31 = vadd.f32 1.0, %v1424_v30 }
 0x672   :  { %1425 = vrcp.f32 %v540_v31 }
 0x67c   :  { %v1426_v32 = vpop.eup %1425 }
 0x67d   :  { %v544_v35 = vmul.f32 %v1426_v32, %v452_v19 }
 0x6e0   :  { %v547_v33 = vpop.permute.xlu0 %546 }
 0x6e1   :  { %v549_v34 = vmul.f32 %v1426_v32, %v547_v33 }
 0x6e3   :  { %551 = vrot.lane.b32.xlu1 %v549_v34, %s1474_s10  ;;  %v868_v34 = vld [vmem:[#allocation2 + $0xc] sm:$0x3] }
 0x755   :  { %v552_v36 = vpop.permute.xlu1 %551 }
 0x756   :  { %v554_v37 = vadd.f32 %v552_v36, %v544_v35 }
 0x758   :  { %1427 = vtanh.f32 %v554_v37 }
 0x762   :  { %v1428_v38 = vpop.eup %1427 }
 0x763   :  { %557 = vrot.lane.b32.xlu0 %v1428_v38, %s1473_s3 }
 0x7d5   :  { %v558_v39 = vpop.permute.xlu0 %557 }
 0x7d6   :  { %v560_v40 = vmul.f32 %v1426_v32, %v558_v39 }
 0x7d8   :  { %564 = vrot.lane.b32.xlu1 %v560_v40, %s1474_s10 }
 0x84a   :  { %v565_v41 = vpop.permute.xlu1 %564 }
 0x84b   :  { %1288 = vmatmul.mubr.msk.f32.vlgmr.msra.gmra.mrb[4].mxu0 %vm258_vm3, %v565_v41 }
 0x84c   :  { %1377 = vmatpush3.bf16.msra.mxu0 %v1530_v7  ;;  %1309 = vmatprep.mubr.msk.f32.mxu0 %vm1470_vm2, %v1471_v9 }
 0x84d   :  { %1378 = vmatprep.subr.bf16.mxu0 %v1469_v3 }
 0x850   :  { %1380 = vmatpush3.bf16.msra.mxu0 %v1540_v10 }
 0x851   :  { %1387 = vmatprep.subr.bf16.mxu0 %v1469_v3 }
 0x91e   :  { %v634_v43 = vpop.f32.mrb[4].mxu0 }
 0x91f   :  { %v638_v44 = vadd.f32 %v634_v43, %v562_v42  ;;  %v1289_v45 = vpop.f32.mrb[5].mxu0 }
 0x921   :  { %1429 = vtanh.f32 %v638_v44  ;;  %v1182_v47 = vmul.f32 -1.442695, %v638_v44 }
 0x923   :  { %1431 = vpow2.f32 %v1182_v47 }
 0x92b   :  { %v1430_v46 = vpop.eup %1429 }
 0x92c   :  { %648 = vrot.lane.b32.xlu0 %v1430_v46, %s1473_s3 }
 0x92d   :  { %v1432_v48 = vpop.eup %1431 }
 0x92e   :  { %v642_v49 = vadd.f32 1.0, %v1432_v48 }
 0x930   :  { %1433 = vrcp.f32 %v642_v49 }
 0x93a   :  { %v1434_v50 = vpop.eup %1433 }
 0x93b   :  { %v646_v53 = vmul.f32 %v1434_v50, %v554_v37 }
 0x99e   :  { %v649_v51 = vpop.permute.xlu0 %648 }
 0x99f   :  { %v651_v52 = vmul.f32 %v1434_v50, %v649_v51  ;;  %v970_v51 = vld [vmem:[#allocation2 + $0xe] sm:$0x3] }
 0x9a1   :  { %653 = vrot.lane.b32.xlu1 %v651_v52, %s1474_s10 }
 0xa13   :  { %v654_v54 = vpop.permute.xlu1 %653 }
 0xa14   :  { %v656_v55 = vadd.f32 %v654_v54, %v646_v53 }
 0xa16   :  { %1435 = vtanh.f32 %v656_v55 }
 0xa20   :  { %v1436_v56 = vpop.eup %1435 }
 0xa21   :  { %659 = vrot.lane.b32.xlu0 %v1436_v56, %s1473_s3 }
 0xa93   :  { %v660_v57 = vpop.permute.xlu0 %659 }
 0xa94   :  { %v662_v58 = vmul.f32 %v1434_v50, %v660_v57 }
 0xa96   :  { %666 = vrot.lane.b32.xlu1 %v662_v58, %s1474_s10 }
 0xb08   :  { %v667_v59 = vpop.permute.xlu1 %666 }
 0xb09   :  { %1299 = vmatmul.mubr.msk.f32.vlgmr.msra.gmra.mrb[4].mxu1 %vm258_vm3, %v667_v59 }
 0xb0a   :  { %1383 = vmatpush3.bf16.msra.mxu1 %v1530_v7  ;;  %1320 = vmatprep.mubr.msk.f32.mxu1 %vm1470_vm2, %v1471_v9 }
 0xb0b   :  { %1384 = vmatprep.subr.bf16.mxu1 %v1469_v3 }
 0xb0e   :  { %1386 = vmatpush3.bf16.msra.mxu1 %v1540_v10 }
 0xb0f   :  { %1393 = vmatprep.subr.bf16.mxu1 %v1469_v3 }
 0xbdc   :  { %v736_v61 = vpop.f32.mrb[4].mxu1 }
 0xbdd   :  { %v740_v62 = vadd.f32 %v736_v61, %v664_v60  ;;  %v1300_v63 = vpop.f32.mrb[5].mxu1 }
 0xbdf   :  { %1437 = vtanh.f32 %v740_v62  ;;  %v1184_v1 = vmul.f32 -1.442695, %v740_v62 }
 0xbe1   :  { %1439 = vpow2.f32 %v1184_v1  ;;  %v1072_v1 = vld [vmem:[%s1655_s4] sm:$0xff] }
 0xbe9   :  { %v1438_v0 = vpop.eup %1437 }
 0xbea   :  { %750 = vrot.lane.b32.xlu0 %v1438_v0, %s1473_s3 }
 0xbeb   :  { %v1440_v2 = vpop.eup %1439 }
 0xbec   :  { %v744_v4 = vadd.f32 1.0, %v1440_v2  ;;  %v1073_v2 = vld [vmem:[%s1655_s4 + $0x8] sm:$0xff] }
 0xbee   :  { %1441 = vrcp.f32 %v744_v4  ;;  %v1074_v4 = vld [vmem:[%s1655_s4 + $0x10] sm:$0xff] }
 0xbf8   :  { %v1442_v5 = vpop.eup %1441 }
 0xbf9   :  { %v748_v11 = vmul.f32 %v1442_v5, %v656_v55 }
 0xc5c   :  { %v751_v6 = vpop.permute.xlu0 %750 }
 0xc5d   :  { %v753_v8 = vmul.f32 %v1442_v5, %v751_v6  ;;  %v1075_v6 = vld [vmem:[%s1655_s4 + $0x18] sm:$0xff] }
 0xc5f   :  { %755 = vrot.lane.b32.xlu1 %v753_v8, %s1474_s10  ;;  %v1397_v8 = vpack.c.bf16 %v1075_v6, %v1074_v4 }
 0xcd1   :  { %v756_v12 = vpop.permute.xlu1 %755 }
 0xcd2   :  { %v758_v13 = vadd.f32 %v756_v12, %v748_v11  ;;  %v11_v12 = vstv %s1656_s5 }
 0xcd3   :  { %12 = vst [vmem:[#allocation3] sm:$0x1] %v11_v12 }
 0xcd4   :  { %1443 = vtanh.f32 %v758_v13 }
 0xcde   :  { %v1444_v14 = vpop.eup %1443 }
 0xcdf   :  { %761 = vrot.lane.b32.xlu0 %v1444_v14, %s1473_s3 }
 0xd51   :  { %v762_v15 = vpop.permute.xlu0 %761 }
 0xd52   :  { %v764_v16 = vmul.f32 %v1442_v5, %v762_v15  ;;  %v1394_v5 = vpack.c.bf16 %v1073_v2, %v1072_v1 }
 0xd54   :  { %768 = vrot.lane.b32.xlu1 %v764_v16, %s1474_s10 }
 0xdc6   :  { %v769_v17 = vpop.permute.xlu1 %768 }
 0xdc7   :  { %1310 = vmatmul.mubr.msk.f32.vlgmr.msra.gmra.mrb[6].mxu0 %vm258_vm3, %v769_v17  ;;  %v1191_v17 = vld [vmem:[#allocation3] ss:$0 sm:$0xff] }
 0xdc8   :  { %1389 = vmatpush3.bf16.msra.mxu0 %v1530_v7  ;;  %1331 = vmatprep.mubr.msk.f32.mxu0 %vm1470_vm2, %v1471_v9 }
 0xdc9   :  { %1390 = vmatprep.subr.bf16.mxu0 %v1469_v3 }
 0xdcc   :  { %1392 = vmatpush3.bf16.msra.mxu0 %v1540_v10 }
 0xe9a   :  { %v838_v19 = vpop.f32.mrb[6].mxu0 }
 0xe9b   :  { %v842_v20 = vadd.f32 %v838_v19, %v766_v18  ;;  %v1311_v21 = vpop.f32.mrb[7].mxu0 }
 0xe9d   :  { %1445 = vtanh.f32 %v842_v20  ;;  %v1186_v23 = vmul.f32 -1.442695, %v842_v20 }
 0xe9f   :  { %1447 = vpow2.f32 %v1186_v23 }
 0xea7   :  { %v1446_v22 = vpop.eup %1445 }
 0xea8   :  { %852 = vrot.lane.b32.xlu0 %v1446_v22, %s1473_s3 }
 0xea9   :  { %v1448_v24 = vpop.eup %1447 }
 0xeaa   :  { %v846_v25 = vadd.f32 1.0, %v1448_v24 }
 0xeac   :  { %1449 = vrcp.f32 %v846_v25 }
 0xeb6   :  { %v1450_v7 = vpop.eup %1449 }
 0xeb7   :  { %v850_v28 = vmul.f32 %v1450_v7, %v758_v13 }
 0xf1a   :  { %v853_v26 = vpop.permute.xlu0 %852 }
 0xf1b   :  { %v855_v27 = vmul.f32 %v1450_v7, %v853_v26 }
 0xf1d   :  { %857 = vrot.lane.b32.xlu1 %v855_v27, %s1474_s10 }
 0xf8f   :  { %v858_v10 = vpop.permute.xlu1 %857 }
 0xf90   :  { %v860_v29 = vadd.f32 %v858_v10, %v850_v28 }
 0xf92   :  { %1451 = vtanh.f32 %v860_v29 }
 0xf9c   :  { %v1452_v30 = vpop.eup %1451 }
 0xf9d   :  { %863 = vrot.lane.b32.xlu0 %v1452_v30, %s1473_s3 }
0x100f   :  { %v864_v31 = vpop.permute.xlu0 %863 }
0x1010   :  { %v866_v32 = vmul.f32 %v1450_v7, %v864_v31 }
0x1012   :  { %870 = vrot.lane.b32.xlu1 %v866_v32, %s1474_s10 }
0x1084   :  { %v871_v33 = vpop.permute.xlu1 %870 }
0x1085   :  { %1321 = vmatmul.mubr.msk.f32.vlgmr.msra.gmra.mrb[6].mxu1 %vm258_vm3, %v871_v33 }
0x1086   :  { %1342 = vmatprep.mubr.msk.f32.mxu1 %vm1470_vm2, %v1471_v9  ;;  %1395 = vmatpush3.bf16.msra.mxu1 %v1394_v5 }
0x1087   :  { %1396 = vmatprep.subr.bf16.mxu1 %v1469_v3 }
0x108a   :  { %1398 = vmatpush3.bf16.msra.mxu1 %v1397_v8 }
0x1158   :  { %v940_v35 = vpop.f32.mrb[6].mxu1 }
0x1159   :  { %v944_v36 = vadd.f32 %v940_v35, %v868_v34  ;;  %v1322_v37 = vpop.f32.mrb[7].mxu1 }
0x115b   :  { %1453 = vtanh.f32 %v944_v36  ;;  %v1188_v39 = vmul.f32 -1.442695, %v944_v36 }
0x115d   :  { %1455 = vpow2.f32 %v1188_v39 }
0x1165   :  { %v1454_v38 = vpop.eup %1453 }
0x1166   :  { %954 = vrot.lane.b32.xlu0 %v1454_v38, %s1473_s3 }
0x1167   :  { %v1456_v40 = vpop.eup %1455 }
0x1168   :  { %v948_v41 = vadd.f32 1.0, %v1456_v40 }
0x116a   :  { %1457 = vrcp.f32 %v948_v41 }
0x1174   :  { %v1458_v42 = vpop.eup %1457 }
0x1175   :  { %v952_v45 = vmul.f32 %v1458_v42, %v860_v29 }
0x11d8   :  { %v955_v43 = vpop.permute.xlu0 %954 }
0x11d9   :  { %v957_v44 = vmul.f32 %v1458_v42, %v955_v43 }
0x11db   :  { %959 = vrot.lane.b32.xlu1 %v957_v44, %s1474_s10 }
0x124d   :  { %v960_v9 = vpop.permute.xlu1 %959 }
0x124e   :  { %v962_v46 = vadd.f32 %v960_v9, %v952_v45 }
0x1250   :  { %1459 = vtanh.f32 %v962_v46 }
0x125a   :  { %v1460_v47 = vpop.eup %1459 }
0x125b   :  { %965 = vrot.lane.b32.xlu0 %v1460_v47, %s1473_s3 }
0x12cd   :  { %v966_v48 = vpop.permute.xlu0 %965 }
0x12ce   :  { %v968_v49 = vmul.f32 %v1458_v42, %v966_v48 }
0x12d0   :  { %972 = vrot.lane.b32.xlu1 %v968_v49, %s1474_s10 }
0x1342   :  { %v973_v50 = vpop.permute.xlu1 %972 }
0x1343   :  { %1332 = vmatmul.mubr.msk.f32.vlgmr.msra.gmra.mrb[8].mxu0 %vm258_vm3, %v973_v50 }
0x1416   :  { %v1042_v52 = vpop.f32.mrb[8].mxu0 }
0x1417   :  { %v1046_v53 = vadd.f32 %v1042_v52, %v970_v51  ;;  %v1333_v54 = vpop.f32.mrb[9].mxu0 }
0x1419   :  { %1461 = vtanh.f32 %v1046_v53  ;;  %v1190_v56 = vmul.f32 -1.442695, %v1046_v53 }
0x141b   :  { %1463 = vpow2.f32 %v1190_v56 }
0x1423   :  { %v1462_v55 = vpop.eup %1461 }
0x1424   :  { %1056 = vrot.lane.b32.xlu0 %v1462_v55, %s1473_s3 }
0x1425   :  { %v1464_v57 = vpop.eup %1463 }
0x1426   :  { %v1050_v58 = vadd.f32 1.0, %v1464_v57 }
0x1428   :  { %1465 = vrcp.f32 %v1050_v58 }
0x1432   :  { %v1466_v59 = vpop.eup %1465 }
0x1433   :  { %v1054_v62 = vmul.f32 %v1466_v59, %v962_v46 }
0x1496   :  { %v1057_v60 = vpop.permute.xlu0 %1056 }
0x1497   :  { %v1059_v61 = vmul.f32 %v1466_v59, %v1057_v60 }
0x1499   :  { %1061 = vrot.lane.b32.xlu1 %v1059_v61, %s1474_s10 }
0x150b   :  { %v1062_v63 = vpop.permute.xlu1 %1061 }
0x150c   :  { %v1064_v0 = vadd.f32 %v1062_v63, %v1054_v62 }
0x150e   :  { %1467 = vtanh.f32 %v1064_v0 }
0x1518   :  { %v1468_v11 = vpop.eup %1467 }
0x1519   :  { %1067 = vrot.lane.b32.xlu0 %v1468_v11, %s1473_s3 }
0x158b   :  { %v1068_v13 = vpop.permute.xlu0 %1067 }
0x158c   :  { %v1070_v14 = vmul.f32 %v1466_v59, %v1068_v13 }
0x158e   :  { %v1071_v15 = vmax.f32 %v1070_v14, 0.0 }
0x1590   :  { %1084 = vrot.lane.b32.xlu1 %v1071_v15, %s1474_s10 }
0x1602   :  { %v1085_v16 = vpop.permute.xlu1 %1084 }
0x1603   :  { %1343 = vmatmul.mubr.msk.f32.vlgmr.msra.gmra.mrb[8].mxu1 %vm258_vm3, %v1085_v16 }
0x16d6   :  { %v1154_v18 = vpop.f32.mrb[8].mxu1 }
0x16d7   :  { %v1155_v3 = vadd.f32 %v1191_v17, %v1154_v18  ;;  %v1344_v19 = vpop.f32.mrb[9].mxu1 }
0x16d9   :  { %1159 = vst.msk [vmem:[%s1657_s6] sm:$0x3] %vm1158_vm4, %v1155_v3 }

</bundles_post_ra>
